<compile_context>
chip_gen: v7x
topology: tpu7x:2x2x1
jax: 0.10.0
libtpu: 0.0.40
codegen_flags: <defaults>
</compile_context>

<pallas_src>
import jax
import jax.numpy as jnp
from jax.experimental import pallas as pl
from jax.experimental.pallas import tpu as pltpu


def _round_up(x, m):
    return ((x + m - 1) // m) * m


def _wq_kernel(x_ref, alpha_ref, bit_ref, o_ref):
    # Per-row parameters for this row block only (tiny (row_tile, 1) tiles).
    a = alpha_ref[...].astype(jnp.float32)   # (row_tile, 1)
    b = bit_ref[...].astype(jnp.float32)     # (row_tile, 1)

    scale = jnp.abs(a)
    bq = jnp.round(b)
    half = jnp.exp2(bq - 1.0)                # 2**(b-1)  (EUP)
    qmax = half - 1.0
    qmin = -half

    x = x_ref[...]
    if x.dtype != jnp.float32:
        x = x.astype(jnp.float32)
    # True division for parity with the torch forward (w / scale); compute has
    # plenty of slack since the kernel is HBM-bandwidth-bound.
    q = jnp.clip(jnp.round(x / scale), qmin, qmax)
    o_ref[...] = (q * scale).astype(o_ref.dtype)


def _target_block_bytes():
    """Generation-aware weight-tile byte budget."""
    try:
        info = pltpu.get_tpu_info()
        vmem = int(getattr(info, "vmem_capacity_bytes", 0)) or (128 << 20)
    except Exception:
        vmem = 128 << 20
    # v7x (<=64 MiB VMEM, 3.2 TB/s HBM): bigger tiles amortize per-step overhead.
    # v5e/v6e (128 MiB VMEM): ~4 MiB already sits near the HBM roofline.
    return (8 << 20) if vmem <= (64 << 20) else (4 << 20)


def weight_quantization_v2(weight, alpha, bit, *, target_block_bytes=None):
    """Pallas forward of WeightQuantizationV2: weight (N, F), alpha/bit (N, 1)."""
    N, F = weight.shape
    itemsize = jnp.dtype(weight.dtype).itemsize
    if target_block_bytes is None:
        target_block_bytes = _target_block_bytes()

    # ---- Feature tiling: prefer full-width tiles; split only if a tile with 8
    #      rows would exceed the byte budget.  Padding waste <=127 lanes, once. ----
    f128 = _round_up(F, 128)
    f_tile_max = max(128, ((target_block_bytes // (8 * itemsize)) // 128) * 128)
    if f128 <= f_tile_max:
        f_tile = F                                  # full width (always legal)
    else:
        n_f = pl.cdiv(f128, f_tile_max)
        f_tile = _round_up(pl.cdiv(f128, n_f), 128)

    # ---- Row tiling: biggest tile within the byte budget, pad waste <8 rows. ----
    if N < 8:
        row_tile = N                                # equal-full-dim escape hatch
    else:
        rows_budget = max(8, ((target_block_bytes // (f_tile * itemsize)) // 8) * 8)
        n_r = pl.cdiv(N, rows_budget)
        row_tile = _round_up(pl.cdiv(N, n_r), 8)

    grid_i = pl.cdiv(N, row_tile)
    grid_j = pl.cdiv(F, f_tile)

    # ---- Give v7x megacore at least 2 parallel steps when the shape allows. ----
    if grid_i * grid_j == 1 and N >= 16:
        row_tile = _round_up(pl.cdiv(N, 2), 8)
        grid_i = pl.cdiv(N, row_tile)

    grid = (grid_i, grid_j)

    # ---- VMEM budget: double-buffered in/out weight tiles + tiny param tiles. ----
    block_bytes = row_tile * f_tile * itemsize
    param_bytes = row_tile * 128 * 4                # (row_tile, 1) lane-padded, f32
    need = 4 * block_bytes + 8 * param_bytes + (2 << 20)
    vmem_limit = int(min(max(need, 4 << 20), 64 << 20))

    return pl.pallas_call(
        _wq_kernel,
        out_shape=jax.ShapeDtypeStruct((N, F), weight.dtype),
        grid_spec=pltpu.PrefetchScalarGridSpec(
            num_scalar_prefetch=0,
            grid=grid,
            in_specs=[
                pl.BlockSpec((row_tile, f_tile), lambda i, j: (i, j)),  # weight tile
                pl.BlockSpec((row_tile, 1), lambda i, j: (i, 0)),       # alpha block
                pl.BlockSpec((row_tile, 1), lambda i, j: (i, 0)),       # bit block
            ],
            out_specs=pl.BlockSpec((row_tile, f_tile), lambda i, j: (i, j)),
        ),
        compiler_params=pltpu.CompilerParams(
            dimension_semantics=("parallel", "parallel"),
            vmem_limit_bytes=vmem_limit,
        ),
    )(weight, alpha, bit)


def init_params(key, out_channels, bit_init=4.0, alpha_init=0.01, alpha_std=0.01):
    """Deterministic parameter init mirroring the PyTorch __init__."""
    a = alpha_init + alpha_std * jax.random.normal(key, (out_channels, 1), jnp.float32)
    alpha = jnp.abs(a)                                    # .abs() as in __init__
    bit = jnp.full((out_channels, 1), bit_init, jnp.float32)
    return alpha, bit


def _reference(weight, alpha, bit):
    """Pure-JAX reference of the same forward math."""
    scale = jnp.abs(alpha)
    b = jnp.round(bit)
    half = 2.0 ** (b - 1.0)
    qmax = half - 1.0
    qmin = -half
    return jnp.clip(jnp.round(weight / scale), qmin, qmax) * scale


if __name__ == "__main__":
    key = jax.random.PRNGKey(0)
    k_w, k_a = jax.random.split(key)

    out_channels = 16    # rows (per-output-channel alpha/bit)
    in_channels = 64     # feature width (< 128: full-dim feature block, no padding)

    weight = 0.05 * jax.random.normal(k_w, (out_channels, in_channels), jnp.float32)
    alpha, bit = init_params(k_a, out_channels, bit_init=4.0)

    wq = weight_quantization_v2(weight, alpha, bit)
    wq = jax.block_until_ready(wq)

    ref = _reference(weight, alpha, bit)
    assert wq.shape == weight.shape and wq.dtype == weight.dtype
    assert jnp.allclose(wq, ref, atol=1e-6, rtol=1e-6)
    print("KERNEL_OK")
</pallas_src>

<mosaic_0001>
module attributes {stable_mosaic.version = 11 : i64} {
  func.func @_wq_kernel(%arg0: i32, %arg1: i32, %arg2: memref<8x64xf32, #tpu.memory_space<vmem>>, %arg3: memref<8x1xf32, #tpu.memory_space<vmem>>, %arg4: memref<8x1xf32, #tpu.memory_space<vmem>>, %arg5: memref<8x64xf32, #tpu.memory_space<vmem>>) attributes {dimension_semantics = [#tpu.dimension_semantics<parallel>, #tpu.dimension_semantics<parallel>], iteration_bounds = array<i64: 2, 1>, scalar_prefetch = 0 : i64, scratch_operands = 0 : i64, tpu.core_type = #tpu.core_type<tc>, window_params = [{transform_indices = @transform_0, window_bounds = array<i64: 8, 64>}, {transform_indices = @transform_1, window_bounds = array<i64: 8, 1>}, {transform_indices = @transform_2, window_bounds = array<i64: 8, 1>}, {transform_indices = @transform_3, window_bounds = array<i64: 8, 64>}]} {
    %c0 = arith.constant 0 : index
    %c0_0 = arith.constant 0 : index
    %0 = vector.load %arg3[%c0, %c0_0] : memref<8x1xf32, #tpu.memory_space<vmem>>, vector<8x1xf32>
    %c0_1 = arith.constant 0 : index
    %c0_2 = arith.constant 0 : index
    %1 = vector.load %arg4[%c0_1, %c0_2] : memref<8x1xf32, #tpu.memory_space<vmem>>, vector<8x1xf32>
    %2 = math.absf %0 : vector<8x1xf32>
    %3 = math.roundeven %1 : vector<8x1xf32>
    %cst = arith.constant 1.000000e+00 : f32
    %4 = vector.broadcast %cst : f32 to vector<8x1xf32>
    %5 = arith.subf %3, %4 : vector<8x1xf32>
    %6 = math.exp2 %5 : vector<8x1xf32>
    %cst_3 = arith.constant 1.000000e+00 : f32
    %7 = vector.broadcast %cst_3 : f32 to vector<8x1xf32>
    %8 = arith.subf %6, %7 : vector<8x1xf32>
    %cst_4 = arith.constant 0.000000e+00 : f32
    %9 = vector.broadcast %cst_4 : f32 to vector<8x1xf32>
    %10 = arith.subf %9, %6 : vector<8x1xf32>
    %c0_5 = arith.constant 0 : index
    %c0_6 = arith.constant 0 : index
    %11 = vector.load %arg2[%c0_5, %c0_6] : memref<8x64xf32, #tpu.memory_space<vmem>>, vector<8x64xf32>
    %12 = vector.broadcast %2 : vector<8x1xf32> to vector<8x64xf32>
    %13 = arith.divf %11, %12 : vector<8x64xf32>
    %14 = math.roundeven %13 : vector<8x64xf32>
    %15 = vector.broadcast %10 : vector<8x1xf32> to vector<8x64xf32>
    %16 = arith.maximumf %15, %14 : vector<8x64xf32>
    %17 = vector.broadcast %8 : vector<8x1xf32> to vector<8x64xf32>
    %18 = arith.minimumf %17, %16 : vector<8x64xf32>
    %19 = vector.broadcast %2 : vector<8x1xf32> to vector<8x64xf32>
    %20 = arith.mulf %18, %19 : vector<8x64xf32>
    %c0_7 = arith.constant 0 : index
    %c0_8 = arith.constant 0 : index
    %21 = vector.load %arg5[%c0_7, %c0_8] : memref<8x64xf32, #tpu.memory_space<vmem>>, vector<8x64xf32>
    tpu.vector_store %arg5[%c0_7, %c0_8], %20 {strides = array<i32>} : memref<8x64xf32, #tpu.memory_space<vmem>>, vector<8x64xf32>,
    return
  }
  func.func @transform_0(%arg0: i32, %arg1: i32) -> (i32, i32) {
    %c0_i32 = arith.constant 0 : i32
    return %arg0, %arg1 : i32, i32
  }
  func.func @transform_1(%arg0: i32, %arg1: i32) -> (i32, i32) {
    %c0_i32 = arith.constant 0 : i32
    %c0_i32_0 = arith.constant 0 : i32
    return %arg0, %c0_i32 : i32, i32
  }
  func.func @transform_2(%arg0: i32, %arg1: i32) -> (i32, i32) {
    %c0_i32 = arith.constant 0 : i32
    %c0_i32_0 = arith.constant 0 : i32
    return %arg0, %c0_i32 : i32, i32
  }
  func.func @transform_3(%arg0: i32, %arg1: i32) -> (i32, i32) {
    %c0_i32 = arith.constant 0 : i32
    return %arg0, %arg1 : i32, i32
  }
}

</mosaic_0001>

<bundles_post_ra>
// kernel: tpu_custom_call.1
= control target key start
LH: loop header
LB: loop body
LE: loop exit
PB: predicated region body
PF: predicated region fallthrough
CT: control target
= control target key end

     0   :  { %8 = vsyncpa [#allocation3], 0  ;;  %s666_s0 = inlined_call_operand.vmem [shape: f32[16,64], index: 0, kind: input, shape index: {}]   ;;  %s667_s1 = inlined_call_operand.vmem [shape: f32[16,1], index: 1, kind: input, shape index: {}]   ;;  %s668_s2 = inlined_call_operand.vmem [shape: f32[16,1], index: 2, kind: input, shape index: {}]   ;;  %s669_s3 = inlined_call_operand.hbm [shape: f32[16,64], index: 3, kind: output, shape index: {}]  }
   0x1   :  { %10 = vsyncpa [#allocation3 + $0x1], 0  ;;  %s548_s12 = smov 0   ;;  %s550_s13 = smov 0  }
   0x2   :  { %s552_s14 = smov 0   ;;  %s554_s15 = smov 0  }
   0x3   :  { %s556_s16 = smov 0   ;;  %s558_s17 = smov 0  }
   0x4 LB: > { %s367_s18 = sadd.s32 4294967295, %s524_s17   ;;  %s368_s19 = sadd.s32 4294967294, %s524_s17   ;;  %s524_s17 = sphi %s558_s17, %s16_s17   ;;  %s520_s16 = sphi %s556_s16, %s676_s16   ;;  %s516_s15 = sphi %s554_s15, %s675_s15   ;;  %s512_s14 = sphi %s552_s14, %s674_s14   ;;  %s508_s13 = sphi %s550_s13, %s673_s13   ;;  %s504_s12 = sphi %s548_s12, %s672_s12  }
   0x5   : > { %s28_s20 = sadd.s32 1, %s520_s16  ;;  %s117_s21 = sadd.s32 1, %s512_s14 }
   0x6   : > { %p30_p0 = scmp.ge.s32.totalorder %s28_s20, 2  ;;  %p127_p1 = scmp.ne.s32.totalorder %s512_s14, %s508_s13 }
   0x7   : > { %p128_p2 = scmp.eq.s32.totalorder %s367_s18, 1  ;;  %p133_p3 = scmp.ne.s32.totalorder %s508_s13, %s504_s12 }
   0x8   : > { %s678_s20 = smov (%p30_p0, %s28_s20), 0  ;;  %p134_p5 = scmp.eq.s32.totalorder %s368_s19, 1 }
   0x9   : > { %p588_p4 = por %p128_p2, %p127_p1  ;;  %s112_s23 = ssub.s32 %s520_s16, %s678_s20 }
   0xa   : > { %p371_p6 = scmp.ge.s32.totalorder %s524_s17, 1  ;;  %p115_p7 = scmp.eq.s32.totalorder %s112_s23, 0 }
   0xb   : > { %p595_p8 = por %p134_p5, %p133_p3  ;;  %p176_p9 = scmp.lt.s32.totalorder %s524_s17, 3 }
   0xc   : > { %s601_s25 = scalar_select %p115_p7, %s512_s14, %s117_s21  }
   0xd   : > { %p177_p10 = pnand %p371_p6, %p176_p9 }
   0xe   : > { %p210_p11 = scmp.lt.s32.totalorder (!%p177_p10), %s516_s15, 1  ;;  %v526_v0 = vmov (!%p177_p10), 0   ;;  %s207_s10 = sand.u32 (!%p177_p10), 1, %s508_s13   ;;  %vm255_vm0 = vcmask (!%p177_p10), 523264  }
   0xf   : > { %180 = sbr.rel (%p177_p10) target bundleno = 193 (0xc1), region = 32  ;;  %440 = vset.pattern.permute.xlu0 (!%p177_p10), %v526_v0  ;;  %441 = vset.pattern.permute.xlu1 (!%p177_p10), %v526_v0  ;;  %s372_s11 = sshll.u32 (!%p177_p10), %s207_s10, 3 }
  0x10   : > { %s379_s18 = sshll.u32 (!%p177_p10), %s516_s15, 7  ;;  %s209_s19 = scalar_lea.vmem (!%p177_p10), [#allocation2], %s372_s11 }
  0x11   : > { %s272_s21 = sshll.u32 (!%p177_p10), %s209_s19, 4  ;;  %s258_s28 = scalar_lea.sflag (!%p177_p10), [#allocation3], %s207_s10  ;;  %s621_s21 = int_to_ptr.vmem [resolvable:$true] %s272_s21 }
  0x12   : > { %s446_s29 = scalar_lea.vmem (!%p177_p10), %s621_s21, 128 }
  0x13   : > { %p447_p12 = scmp.ne.s32.totalorder (!%p177_p10), %s621_s21, %s446_s29 }
  0x15   : > { %p448_p13 = pnand (!%p177_p10), %p447_p12, %p588_p4 }
  0x16   : > { %s211_s26 = scalar_select %p210_p11, %s516_s15, 1 }
  0x17   : > { %p449_p0 = pneg %p448_p13  ;;  %s527_s15 = smov [#allocation2]  }
  0x18   : > { %s373_s27 = sshll.u32 %s211_s26, 3 }
  0x19   : > { %s220_s30 = scalar_lea.vmem %s667_s1, %s373_s27  ;;  %s224_s6 = scalar_lea.vmem %s668_s2, %s373_s27 }
  0x1a   : > { %v225_v1 = vld [vmem:[%s220_s30] sm:$0xff]  ;;  %s216_s9 = scalar_lea.vmem %s666_s0, %s373_s27  ;;  %s619_s27 = scalar_lea.hbm %s669_s3, %s379_s18 }
  0x1b   : > { %v226_v2 = vld [vmem:[%s224_s6] sm:$0xff]  ;;  %v227_v3 = vand.u32 2147483647, %v225_v1  ;;  %s450_s30 = sshll.u32 %s527_s15, 4  ;;  %s451_s30 = int_to_ptr.vmem [resolvable:$false] %s450_s30 }
  0x1c   : > { %v382_v4 = vround.rtne.f32 %v226_v2  ;;  %v233_v10 = vld [vmem:[%s216_s9] sm:$0xff]  ;;  %s452_s4 = scalar_lea.vmem %s451_s30, 256  ;;  %p453_p1 = scmp.lt.s32.totalorder %s621_s21, %s451_s30 }
  0x1d   : > { %236 = vperm.xlu0 %440, %v227_v3   ;;  %p454_p2 = scmp.lt.s32.totalorder %s452_s4, %s446_s29 }
  0x1e   : > { %v376_v5 = vadd.f32 -1.0, %v382_v4 }
  0x1f   : > { %p455_p3 = por %p454_p2, %p453_p1 }
  0x20   : > { %442 = vpow2.f32 %v376_v5 }
  0x21   : > { %p456_p5 = pnand %p455_p3, %p449_p0 }
  0x2a   : > { %v443_v6 = vpop.eup %442 }
  0x2b   : > { %v232_v7 = vsub.f32 0.0, %v443_v6  ;;  %v377_v8 = vadd.f32 -1.0, %v443_v6 }
  0x2d   : > { %244 = vperm.xlu0 %440, %v232_v7   ;;  %250 = vperm.xlu1 %441, %v377_v8  }
  0x9c   : > { %v237_v9 = vpop.permute.xlu0 %236 }
  0x9d   : > { %444 = vrcp.f32 %v237_v9 }
  0xa7   : > { %v445_v11 = vpop.eup %444 }
  0xa8   : > { %v240_v12 = vmul.f32 %v445_v11, %v233_v10 }
  0xaa   : > { %v383_v13 = vround.rtne.f32 %v240_v12 }
  0xac   : > { %v245_v14 = vpop.permute.xlu0 %244  ;;  %v251_v15 = vpop.permute.xlu1 %250 }
  0xad   : > { %v247_v16 = vmax.f32 %v245_v14, %v383_v13 }
  0xaf   : > { %v253_v17 = vmin.f32 %v251_v15, %v247_v16 }
  0xb1   : > { %v254_v18 = vmul.f32 %v253_v17, %v237_v9 }
  0xb3   : > { %256 = vst.msk [vmem:[%s209_s19] sm:$0xff] %vm255_vm0, %v254_v18 }
  0xb4   : > { %459 = shalt.err (!%p456_p5)
}
  0xb5   : > { %s460_s5 = scalar_lea.hbm %s619_s27, 128  ;;  %s464_s8 = scalar_lea.hbm %s669_s3, 256 }
  0xb6   : > { %p461_p6 = scmp.ne.s32.totalorder %s619_s27, %s460_s5  ;;  %p465_p10 = scmp.lt.u32.totalorder %s619_s27, %s669_s3 }
  0xb7   : > { %p466_p11 = scmp.lt.u32.totalorder %s464_s8, %s460_s5  ;;  %p468_p13 = scmp.lt.u32.totalorder %s460_s5, %s619_s27 }
  0xb8   : > { %p462_p7 = pnand %p461_p6, %p588_p4 }
  0xb9   : > { %p467_p12 = por %p466_p11, %p465_p10 }
  0xba   : > { %p463_p9 = pneg %p462_p7 }
  0xbb   : > { %p469_p0 = por %p468_p13, %p467_p12 }
  0xbd   : > { %p470_p1 = pnand %p469_p0, %p463_p9 }
  0xbf   : > { %473 = shalt.err (!%p470_p1)
}
  0xc0   : > { %384 = dma.vmem_to_hbm [thread:$0]  (%p588_p4), %s621_s21, 128, %s619_s27, %s258_s28  }
  0xc1 PF: > { %p390_p2 = scmp.ge.s32.totalorder %s524_s17, 2  ;;  %s284_s11 = sand.u32 1, %s504_s12  }
  0xc2   : > { %s285_s18 = scalar_lea.sflag [#allocation3], %s284_s11 }
  0xc3   : > { %p387_p3 = pnand %p390_p2, %p595_p8 }
  0xc5   : > { %499 = dma.done.wait (!%p387_p3), %s285_s18, 128  }
  0xc6   : > { %501 = vsyncadd (!%p387_p3), %s285_s18, 4294967168  ;;  %s16_s17 = sadd.s32 1, %s524_s17   ;;  %s672_s12 = smov %s508_s13 }
  0xc7   : > { %p13_p5 = scmp.ge.s32.totalorder %s16_s17, 4   ;;  %s673_s13 = smov %s512_s14 }
  0xc8   : > { %s674_s14 = smov %s601_s25  ;;  %s675_s15 = smov %s520_s16 }
  0xc9   : > { %s676_s16 = smov %s678_s20  ;;  %15 = sbr.rel (!%p13_p5) target bundleno = 4 (0x4), region = 73 }
  0xd0   :  { %290 = vsyncpa [#allocation3], 1 }
  0xd1   :  { %292 = vsyncpa [#allocation3 + $0x1], 1 }

</bundles_post_ra>
